<compile_context>
chip_gen: v7x
topology: tpu7x:2x2x1
jax: 0.10.0
libtpu: 0.0.40
codegen_flags: <defaults>
</compile_context>

<pallas_src>
import functools

import jax
import jax.numpy as jnp
from jax.experimental import pallas as pl
from jax.experimental.pallas import tpu as pltpu

_SQRT_HALF = 0.7071067811865475
_GELU_TANH_C = 0.7978845608028654  # sqrt(2/pi)


def _ffn_kernel(*args, use_gate, pre_norm, approx_gelu):
    """Fused LayerNorm(opt) -> Linear1[+Gate] -> GELU -> Gate(opt) -> Linear2."""
    i = 0
    if pre_norm:
        ln_g_ref, ln_b_ref = args[0], args[1]
        i = 2
    w_up_ref, b_up_ref, w2_ref, b2_ref, x_ref, o_ref, acc_ref = args[i:i + 7]
    xn_ref = args[i + 7] if pre_norm else None

    k = pl.program_id(1)

    if pre_norm:
        @pl.when(k == 0)
        def _layer_norm():
            # One-pass LayerNorm stats in f32, cached for all d_ff stripes.
            xf = x_ref[...].astype(jnp.float32)
            mean = jnp.mean(xf, axis=-1, keepdims=True)
            var = jnp.mean(xf * xf, axis=-1, keepdims=True) - mean * mean
            var = jnp.maximum(var, 0.0)
            xn = (xf - mean) * jax.lax.rsqrt(var + 1e-5)
            xn = xn * ln_g_ref[...].astype(jnp.float32) \
                 + ln_b_ref[...].astype(jnp.float32)
            xn_ref[...] = xn.astype(xn_ref.dtype)
        xn = xn_ref[...]
    else:
        xn = x_ref[...]

    # Single up-projection matmul; when gated, the stripe is [w1_k | wg_k].
    hg = jnp.dot(xn, w_up_ref[...], preferred_element_type=jnp.float32)
    hg = hg + b_up_ref[...].astype(jnp.float32)

    if use_gate:
        half = w_up_ref.shape[1] // 2
        h, g = hg[:, :half], hg[:, half:]
    else:
        h = hg

    if approx_gelu:
        # tanh-approx GELU -> EUP slot (otherwise idle); for VALU-limited shapes.
        h = 0.5 * h * (1.0 + jnp.tanh(_GELU_TANH_C * (h + 0.044715 * h * h * h)))
    else:
        # Exact erf GELU == nn.GELU() default.
        h = 0.5 * h * (1.0 + jax.lax.erf(h * _SQRT_HALF))

    # Dropout: identity (eval mode).

    if use_gate:
        h = h * jax.nn.sigmoid(g)

    contrib = jnp.dot(h.astype(w2_ref.dtype), w2_ref[...],
                      preferred_element_type=jnp.float32)

    @pl.when(k == 0)
    def _first_stripe():
        acc_ref[...] = contrib          # no zero-fill / read-add pass

    @pl.when(k != 0)
    def _accumulate():
        acc_ref[...] += contrib

    @pl.when(k == pl.num_programs(1) - 1)
    def _finalize():
        out = acc_ref[...] + b2_ref[...].astype(jnp.float32)
        o_ref[...] = out.astype(o_ref.dtype)


def _device_kind():
    try:
        return jax.devices()[0].device_kind.lower()
    except Exception:
        return ""


def _vmem_capacity_bytes(kind):
    try:
        cap = int(getattr(pltpu.get_tpu_info(), "vmem_capacity_bytes", 0))
        if cap > 0:
            return cap
    except Exception:
        pass
    if "v7" in kind:
        return 64 << 20
    if "v2" in kind or "v3" in kind:
        return 16 << 20
    return 128 << 20


def _tile_targets(kind, use_gate):
    """Per-generation (tile_m, tile_f) defaults (arithmetic-intensity crossovers)."""
    if "v7" in kind:
        return 512, (128 if use_gate else 256)   # 64 MiB VMEM; ~310 flop/B crossover
    if "v6" in kind:
        return 1024, 256                         # ~650-700 flop/B crossover
    if "v5e" in kind or "v5 lite" in kind or "v5lite" in kind:
        return 512, 512                          # ~240 flop/B crossover
    return 512, 256


def _f_tile_candidates(d_ff):
    """Descending list of lane-aligned d_ff tile sizes (divisors, mult of 128) + d_ff."""
    cands = [t for t in range(128, d_ff, 128) if d_ff % t == 0]
    cands.append(d_ff)
    return sorted(set(cands), reverse=True)


def _vmem_estimate(tm, tf, D, use_gate, pre_norm, x_isz, w_isz):
    up_cols = (2 if use_gate else 1) * tf
    weights = 2 * (D * up_cols + tf * D) * w_isz      # double-buffered weight stripes
    biases = 2 * (up_cols + 2 * D) * 4                # biases / LN params (small)
    io = 2 * 2 * tm * D * x_isz                       # x-in + out, double-buffered
    acc = tm * D * 4                                  # f32 accumulator
    xn = tm * D * x_isz if pre_norm else 0            # cached LN(x)
    return weights + biases + io + acc + xn


def deepseek_ffn(x, params, *, use_gate=False, pre_norm=False, approx_gelu=False,
                 tile_m=None, tile_f=None, vmem_limit_bytes=None):
    """x: [batch, seq, d_model] -> [batch, seq, d_model]."""
    B, S, D = x.shape
    d_ff = params["w1"].shape[1]
    M = B * S
    x2 = x.reshape(M, D)

    x_isz = x.dtype.itemsize
    w_isz = params["w1"].dtype.itemsize

    kind = _device_kind()
    cap = _vmem_capacity_bytes(kind)
    if vmem_limit_bytes is None:
        vmem_limit_bytes = max(int(cap) - (4 << 20), 16 << 20)
    budget = int(min(int(vmem_limit_bytes), cap) * 0.85)

    tm_target, tf_target = _tile_targets(kind, use_gate)
    if tile_m is not None:
        tm_target = int(tile_m)
    if tile_f is not None:
        tf_target = int(tile_f)

    # v7x has 2 TensorCores sharing the "parallel" row axis: keep >= 2 row tiles.
    if "v7" in kind and M > 8 and tile_m is None:
        half_rows = (((M + 1) // 2) + 7) // 8 * 8
        tm_target = min(tm_target, half_rows)

    tm = min(tm_target, M)
    if tm < M:
        tm = max(8, (tm // 8) * 8)

    cands = _f_tile_candidates(d_ff)
    tf = next((c for c in cands if c <= tf_target), cands[-1])

    # Shrink tiles until the working set fits the VMEM budget; fail loudly instead
    # of silently streaming the whole weight matrix per step.
    while _vmem_estimate(tm, tf, D, use_gate, pre_norm, x_isz, w_isz) > budget:
        smaller_f = [c for c in cands if c < tf]
        if smaller_f:
            tf = smaller_f[0]
            continue
        new_tm = max(8, (tm // 2 // 8) * 8)
        if new_tm < tm:
            tm = new_tm
            continue
        raise ValueError(
            f"deepseek_ffn: cannot tile d_model={D}, d_ff={d_ff} within VMEM budget "
            f"{budget} bytes; pass smaller tile_m/tile_f or use a 128-aligned d_ff.")

    nk = d_ff // tf
    n_row = pl.cdiv(M, tm)

    # --- pack gate weights next to the up-projection, per d_ff stripe ---------
    b2_r = params["b2"].reshape(1, D)
    if use_gate:
        w1s = params["w1"].reshape(D, nk, tf)
        wgs = params["wg"].reshape(D, nk, tf)
        w_up = jnp.concatenate([w1s, wgs], axis=2).reshape(D, nk * 2 * tf)
        b1s = params["b1"].reshape(nk, tf)
        bgs = params["bg"].reshape(nk, tf)
        b_up = jnp.concatenate([b1s, bgs], axis=1).reshape(1, nk * 2 * tf)
        up_cols = 2 * tf
    else:
        w_up = params["w1"]
        b_up = params["b1"].reshape(1, d_ff)
        up_cols = tf

    # --- serpentine d_ff ordering on odd row tiles (reuse boundary stripe) ----
    if nk > 1:
        def kmap(i, k):
            return k + (i % 2) * (nk - 1 - 2 * k)
    else:
        def kmap(i, k):
            return k

    inputs, in_specs = [], []

    def add(arr, spec):
        inputs.append(arr)
        in_specs.append(spec)

    if pre_norm:
        add(params["ln_g"].reshape(1, D), pl.BlockSpec((1, D), lambda i, k: (0, 0)))
        add(params["ln_b"].reshape(1, D), pl.BlockSpec((1, D), lambda i, k: (0, 0)))
    add(w_up, pl.BlockSpec((D, up_cols), lambda i, k: (0, kmap(i, k))))
    add(b_up, pl.BlockSpec((1, up_cols), lambda i, k: (0, kmap(i, k))))
    add(params["w2"], pl.BlockSpec((tf, D), lambda i, k: (kmap(i, k), 0)))
    add(b2_r, pl.BlockSpec((1, D), lambda i, k: (0, 0)))
    add(x2, pl.BlockSpec((tm, D), lambda i, k: (i, 0)))

    scratch_shapes = [pltpu.VMEM((tm, D), jnp.float32)]          # f32 accumulator
    if pre_norm:
        scratch_shapes.append(pltpu.VMEM((tm, D), x.dtype))      # cached LN(x)

    n_mats = 3 if use_gate else 2
    flops = 2 * M * D * d_ff * n_mats
    transcendentals = M * d_ff * (2 if use_gate else 1)
    weight_bytes = (int(w_up.size) + int(params["w2"].size)) * w_isz \
        + int(b_up.size) * b_up.dtype.itemsize + D * b2_r.dtype.itemsize
    if pre_norm:
        weight_bytes += 2 * D * params["ln_g"].dtype.itemsize
    # Weights are streamed once per row tile.
    bytes_accessed = int(n_row * weight_bytes + 2 * M * D * x_isz)

    kernel = functools.partial(_ffn_kernel, use_gate=use_gate, pre_norm=pre_norm,
                               approx_gelu=approx_gelu)

    out2 = pl.pallas_call(
        kernel,
        out_shape=jax.ShapeDtypeStruct((M, D), x.dtype),
        grid_spec=pltpu.PrefetchScalarGridSpec(
            num_scalar_prefetch=0,
            grid=(n_row, nk),
            in_specs=in_specs,
            out_specs=pl.BlockSpec((tm, D), lambda i, k: (i, 0)),
            scratch_shapes=scratch_shapes,
        ),
        compiler_params=pltpu.CompilerParams(
            dimension_semantics=("parallel", "arbitrary"),
            vmem_limit_bytes=int(vmem_limit_bytes)),
        cost_estimate=pl.CostEstimate(
            flops=int(flops), transcendentals=int(transcendentals),
            bytes_accessed=int(bytes_accessed)),
    )(*inputs)

    return out2.reshape(B, S, D)


def init_params(key, d_model, d_ff, dtype=jnp.float32):
    ks = jax.random.split(key, 6)
    scale1 = 1.0 / jnp.sqrt(d_model)
    scale2 = 1.0 / jnp.sqrt(d_ff)
    return {
        "ln_g": jnp.ones((d_model,), dtype),
        "ln_b": jnp.zeros((d_model,), dtype),
        "w1": (jax.random.normal(ks[0], (d_model, d_ff)) * scale1).astype(dtype),
        "b1": (jax.random.normal(ks[1], (d_ff,)) * 0.02).astype(dtype),
        "wg": (jax.random.normal(ks[2], (d_model, d_ff)) * scale1).astype(dtype),
        "bg": (jax.random.normal(ks[3], (d_ff,)) * 0.02).astype(dtype),
        "w2": (jax.random.normal(ks[4], (d_ff, d_model)) * scale2).astype(dtype),
        "b2": (jax.random.normal(ks[5], (d_model,)) * 0.02).astype(dtype),
    }


def _reference(x, p, *, use_gate, pre_norm):
    x = x.astype(jnp.float32)
    if pre_norm:
        mu = jnp.mean(x, -1, keepdims=True)
        var = jnp.mean((x - mu) ** 2, -1, keepdims=True)
        x = (x - mu) / jnp.sqrt(var + 1e-5) * p["ln_g"].astype(jnp.float32) \
            + p["ln_b"].astype(jnp.float32)
    h = jax.nn.gelu(x @ p["w1"].astype(jnp.float32) + p["b1"].astype(jnp.float32),
                    approximate=False)
    if use_gate:
        h = h * jax.nn.sigmoid(x @ p["wg"].astype(jnp.float32)
                               + p["bg"].astype(jnp.float32))
    return h @ p["w2"].astype(jnp.float32) + p["b2"].astype(jnp.float32)


if __name__ == "__main__":
    key = jax.random.PRNGKey(0)

    # Config 1: gated + pre-norm, f32, forced small tiles so the kernel exercises
    # multiple row tiles, multiple d_ff stripes, serpentine ordering, gate fusion.
    batch, seq, d_model, d_ff = 2, 8, 128, 512
    kx, kp, key = jax.random.split(key, 3)
    x = jax.random.normal(kx, (batch, seq, d_model), dtype=jnp.float32)
    params = init_params(kp, d_model, d_ff)
    out = deepseek_ffn(x, params, use_gate=True, pre_norm=True, tile_m=8, tile_f=128)
    out = jax.block_until_ready(out)
    ref = _reference(x, params, use_gate=True, pre_norm=True)
    assert out.shape == (batch, seq, d_model)
    assert jnp.allclose(out, ref, atol=1e-4, rtol=1e-4), \
        float(jnp.max(jnp.abs(out - ref)))

    # Config 2: plain FFN (no gate, no pre-norm), small non-128-aligned dims,
    # auto tile selection (single stripe / single row tile).
    batch, seq, d_model, d_ff = 2, 8, 32, 96
    kx, kp, key = jax.random.split(key, 3)
    x = jax.random.normal(kx, (batch, seq, d_model), dtype=jnp.float32)
    params = init_params(kp, d_model, d_ff)
    out = deepseek_ffn(x, params, use_gate=False, pre_norm=False)
    out = jax.block_until_ready(out)
    ref = _reference(x, params, use_gate=False, pre_norm=False)
    assert jnp.allclose(out, ref, atol=1e-4, rtol=1e-4), \
        float(jnp.max(jnp.abs(out - ref)))

    # Config 3: bf16 gated + pre-norm, fully automatic per-device tiling
    # (exercises the mixed-precision MXU path; looser tolerance for bf16 rounding).
    batch, seq, d_model, d_ff = 2, 8, 128, 512
    kx, kp = jax.random.split(key)
    x = jax.random.normal(kx, (batch, seq, d_model), dtype=jnp.bfloat16)
    params = init_params(kp, d_model, d_ff, dtype=jnp.bfloat16)
    out = deepseek_ffn(x, params, use_gate=True, pre_norm=True)
    out = jax.block_until_ready(out)
    ref = _reference(x.astype(jnp.float32), params, use_gate=True, pre_norm=True)
    assert out.shape == (batch, seq, d_model)
    assert jnp.allclose(out.astype(jnp.float32), ref, atol=5e-2, rtol=5e-2), \
        float(jnp.max(jnp.abs(out.astype(jnp.float32) - ref)))

    print("KERNEL_OK")
</pallas_src>

<mosaic_0001>
module attributes {stable_mosaic.version = 11 : i64} {
  func.func @_ffn_kernel(%arg0: i32, %arg1: i32, %arg2: memref<1x128xf32, #tpu.memory_space<vmem>>, %arg3: memref<1x128xf32, #tpu.memory_space<vmem>>, %arg4: memref<128x256xf32, #tpu.memory_space<vmem>>, %arg5: memref<1x256xf32, #tpu.memory_space<vmem>>, %arg6: memref<128x128xf32, #tpu.memory_space<vmem>>, %arg7: memref<1x128xf32, #tpu.memory_space<vmem>>, %arg8: memref<8x128xf32, #tpu.memory_space<vmem>>, %arg9: memref<8x128xf32, #tpu.memory_space<vmem>>, %arg10: memref<8x128xf32, #tpu.memory_space<vmem>>, %arg11: memref<8x128xf32, #tpu.memory_space<vmem>>) attributes {dimension_semantics = [#tpu.dimension_semantics<parallel>, #tpu.dimension_semantics<arbitrary>], iteration_bounds = array<i64: 2, 4>, scalar_prefetch = 0 : i64, scratch_operands = 2 : i64, tpu.core_type = #tpu.core_type<tc>, window_params = [{pipeline_mode = #tpu.pipeline_mode<synchronous>, transform_indices = @transform_0, window_bounds = array<i64: 1, 128>}, {pipeline_mode = #tpu.pipeline_mode<synchronous>, transform_indices = @transform_1, window_bounds = array<i64: 1, 128>}, {transform_indices = @transform_2, window_bounds = array<i64: 128, 256>}, {transform_indices = @transform_3, window_bounds = array<i64: 1, 256>}, {transform_indices = @transform_4, window_bounds = array<i64: 128, 128>}, {pipeline_mode = #tpu.pipeline_mode<synchronous>, transform_indices = @transform_5, window_bounds = array<i64: 1, 128>}, {transform_indices = @transform_6, window_bounds = array<i64: 8, 128>}, {transform_indices = @transform_7, window_bounds = array<i64: 8, 128>}]} {
    %c0_i32 = arith.constant 0 : i32
    %0 = arith.cmpi eq, %arg1, %c0_i32 : i32
    %1 = arith.extui %0 : i1 to i32
    %c0_i32_0 = arith.constant 0 : i32
    %2 = arith.cmpi ne, %1, %c0_i32_0 : i32
    scf.if %2 {
      %c0_18 = arith.constant 0 : index
      %c0_19 = arith.constant 0 : index
      %36 = vector.load %arg8[%c0_18, %c0_19] : memref<8x128xf32, #tpu.memory_space<vmem>>, vector<8x128xf32>
      %cst_20 = arith.constant dense<0.000000e+00> : vector<8xf32>
      %37 = vector.multi_reduction <add>, %36, %cst_20 [1] : vector<8x128xf32> to vector<8xf32>
      %38 = vector.shape_cast %37 : vector<8xf32> to vector<8x1xf32>
      %cst_21 = arith.constant 1.280000e+02 : f32
      %39 = vector.broadcast %cst_21 : f32 to vector<8x1xf32>
      %40 = arith.divf %38, %39 : vector<8x1xf32>
      %41 = arith.mulf %36, %36 : vector<8x128xf32>
      %cst_22 = arith.constant dense<0.000000e+00> : vector<8xf32>
      %42 = vector.multi_reduction <add>, %41, %cst_22 [1] : vector<8x128xf32> to vector<8xf32>
      %43 = vector.shape_cast %42 : vector<8xf32> to vector<8x1xf32>
      %cst_23 = arith.constant 1.280000e+02 : f32
      %44 = vector.broadcast %cst_23 : f32 to vector<8x1xf32>
      %45 = arith.divf %43, %44 : vector<8x1xf32>
      %46 = arith.mulf %40, %40 : vector<8x1xf32>
      %47 = arith.subf %45, %46 : vector<8x1xf32>
      %cst_24 = arith.constant 0.000000e+00 : f32
      %48 = vector.broadcast %cst_24 : f32 to vector<8x1xf32>
      %49 = arith.maximumf %47, %48 : vector<8x1xf32>
      %50 = vector.broadcast %40 : vector<8x1xf32> to vector<8x128xf32>
      %51 = arith.subf %36, %50 : vector<8x128xf32>
      %cst_25 = arith.constant 9.99999974E-6 : f32
      %52 = vector.broadcast %cst_25 : f32 to vector<8x1xf32>
      %53 = arith.addf %49, %52 : vector<8x1xf32>
      %54 = math.rsqrt %53 : vector<8x1xf32>
      %55 = vector.broadcast %54 : vector<8x1xf32> to vector<8x128xf32>
      %56 = arith.mulf %51, %55 : vector<8x128xf32>
      %c0_26 = arith.constant 0 : index
      %c0_27 = arith.constant 0 : index
      %57 = vector.load %arg2[%c0_26, %c0_27] : memref<1x128xf32, #tpu.memory_space<vmem>>, vector<1x128xf32>
      %58 = vector.broadcast %57 : vector<1x128xf32> to vector<8x128xf32>
      %59 = arith.mulf %56, %58 : vector<8x128xf32>
      %c0_28 = arith.constant 0 : index
      %c0_29 = arith.constant 0 : index
      %60 = vector.load %arg3[%c0_28, %c0_29] : memref<1x128xf32, #tpu.memory_space<vmem>>, vector<1x128xf32>
      %61 = vector.broadcast %60 : vector<1x128xf32> to vector<8x128xf32>
      %62 = arith.addf %59, %61 : vector<8x128xf32>
      %c0_30 = arith.constant 0 : index
      %c0_31 = arith.constant 0 : index
      %63 = vector.load %arg11[%c0_30, %c0_31] : memref<8x128xf32, #tpu.memory_space<vmem>>, vector<8x128xf32>
      tpu.vector_store %arg11[%c0_30, %c0_31], %62 {strides = array<i32>} : memref<8x128xf32, #tpu.memory_space<vmem>>, vector<8x128xf32>,
    } else {
    }
    %c0 = arith.constant 0 : index
    %c0_1 = arith.constant 0 : index
    %3 = vector.load %arg11[%c0, %c0_1] : memref<8x128xf32, #tpu.memory_space<vmem>>, vector<8x128xf32>
    %c0_2 = arith.constant 0 : index
    %c0_3 = arith.constant 0 : index
    %4 = vector.load %arg4[%c0_2, %c0_3] : memref<128x256xf32, #tpu.memory_space<vmem>>, vector<128x256xf32>
    %cst = arith.constant dense<0.000000e+00> : vector<8x256xf32>
    %5 = tpu.matmul %3, %4, %cst {dimension_numbers = #tpu.dot_dimension_numbers<[1], [0], [0], [1], [0, 0, 1, 1], [], []>} : vector<8x128xf32>, vector<128x256xf32>, vector<8x256xf32> -> vector<8x256xf32>
    %c0_4 = arith.constant 0 : index
    %c0_5 = arith.constant 0 : index
    %6 = vector.load %arg5[%c0_4, %c0_5] : memref<1x256xf32, #tpu.memory_space<vmem>>, vector<1x256xf32>
    %7 = vector.broadcast %6 : vector<1x256xf32> to vector<8x256xf32>
    %8 = arith.addf %5, %7 : vector<8x256xf32>
    %9 = vector.extract_strided_slice %8 {offsets = [0, 0], sizes = [8, 128], strides = [1, 1]} : vector<8x256xf32> to vector<8x128xf32>
    %10 = vector.extract_strided_slice %8 {offsets = [0, 128], sizes = [8, 128], strides = [1, 1]} : vector<8x256xf32> to vector<8x128xf32>
    %cst_6 = arith.constant 5.000000e-01 : f32
    %11 = vector.broadcast %cst_6 : f32 to vector<8x128xf32>
    %12 = arith.mulf %11, %9 : vector<8x128xf32>
    %cst_7 = arith.constant 0.707106769 : f32
    %13 = vector.broadcast %cst_7 : f32 to vector<8x128xf32>
    %14 = arith.mulf %9, %13 : vector<8x128xf32>
    %15 = math.erf %14 : vector<8x128xf32>
    %cst_8 = arith.constant 1.000000e+00 : f32
    %16 = vector.broadcast %cst_8 : f32 to vector<8x128xf32>
    %17 = arith.addf %16, %15 : vector<8x128xf32>
    %18 = arith.mulf %12, %17 : vector<8x128xf32>
    %19 = arith.negf %10 : vector<8x128xf32>
    %20 = math.exp %19 : vector<8x128xf32>
    %cst_9 = arith.constant 1.000000e+00 : f32
    %21 = vector.broadcast %cst_9 : f32 to vector<8x128xf32>
    %22 = arith.addf %21, %20 : vector<8x128xf32>
    %23 = arith.divf %21, %22 : vector<8x128xf32>
    %24 = arith.mulf %18, %23 : vector<8x128xf32>
    %c0_10 = arith.constant 0 : index
    %c0_11 = arith.constant 0 : index
    %25 = vector.load %arg6[%c0_10, %c0_11] : memref<128x128xf32, #tpu.memory_space<vmem>>, vector<128x128xf32>
    %cst_12 = arith.constant dense<0.000000e+00> : vector<8x128xf32>
    %26 = tpu.matmul %24, %25, %cst_12 {dimension_numbers = #tpu.dot_dimension_numbers<[1], [0], [0], [1], [0, 0, 1, 1], [], []>} : vector<8x128xf32>, vector<128x128xf32>, vector<8x128xf32> -> vector<8x128xf32>
    %c0_i32_13 = arith.constant 0 : i32
    %27 = arith.cmpi eq, %arg1, %c0_i32_13 : i32
    %28 = arith.extui %27 : i1 to i32
    %c0_i32_14 = arith.constant 0 : i32
    %29 = arith.cmpi ne, %28, %c0_i32_14 : i32
    scf.if %29 {
      %c0_18 = arith.constant 0 : index
      %c0_19 = arith.constant 0 : index
      %36 = vector.load %arg10[%c0_18, %c0_19] : memref<8x128xf32, #tpu.memory_space<vmem>>, vector<8x128xf32>
      tpu.vector_store %arg10[%c0_18, %c0_19], %26 {strides = array<i32>} : memref<8x128xf32, #tpu.memory_space<vmem>>, vector<8x128xf32>,
    } else {
    }
    %c0_i32_15 = arith.constant 0 : i32
    %30 = arith.cmpi ne, %arg1, %c0_i32_15 : i32
    %31 = arith.extui %30 : i1 to i32
    %c0_i32_16 = arith.constant 0 : i32
    %32 = arith.cmpi ne, %31, %c0_i32_16 : i32
    scf.if %32 {
      %c0_18 = arith.constant 0 : index
      %c0_19 = arith.constant 0 : index
      %36 = vector.load %arg10[%c0_18, %c0_19] : memref<8x128xf32, #tpu.memory_space<vmem>>, vector<8x128xf32>
      %37 = arith.addf %36, %26 : vector<8x128xf32>
      %c0_20 = arith.constant 0 : index
      %c0_21 = arith.constant 0 : index
      %38 = vector.load %arg10[%c0_20, %c0_21] : memref<8x128xf32, #tpu.memory_space<vmem>>, vector<8x128xf32>
      tpu.vector_store %arg10[%c0_20, %c0_21], %37 {strides = array<i32>} : memref<8x128xf32, #tpu.memory_space<vmem>>, vector<8x128xf32>,
    } else {
    }
    %c3_i32 = arith.constant 3 : i32
    %33 = arith.cmpi eq, %arg1, %c3_i32 : i32
    %34 = arith.extui %33 : i1 to i32
    %c0_i32_17 = arith.constant 0 : i32
    %35 = arith.cmpi ne, %34, %c0_i32_17 : i32
    scf.if %35 {
      %c0_18 = arith.constant 0 : index
      %c0_19 = arith.constant 0 : index
      %36 = vector.load %arg10[%c0_18, %c0_19] : memref<8x128xf32, #tpu.memory_space<vmem>>, vector<8x128xf32>
      %c0_20 = arith.constant 0 : index
      %c0_21 = arith.constant 0 : index
      %37 = vector.load %arg7[%c0_20, %c0_21] : memref<1x128xf32, #tpu.memory_space<vmem>>, vector<1x128xf32>
      %38 = vector.broadcast %37 : vector<1x128xf32> to vector<8x128xf32>
      %39 = arith.addf %36, %38 : vector<8x128xf32>
      %c0_22 = arith.constant 0 : index
      %c0_23 = arith.constant 0 : index
      %40 = vector.load %arg9[%c0_22, %c0_23] : memref<8x128xf32, #tpu.memory_space<vmem>>, vector<8x128xf32>
      tpu.vector_store %arg9[%c0_22, %c0_23], %39 {strides = array<i32>} : memref<8x128xf32, #tpu.memory_space<vmem>>, vector<8x128xf32>,
    } else {
    }
    return
  }
  func.func @transform_0(%arg0: i32, %arg1: i32) -> (i32, i32) {
    %c0_i32 = arith.constant 0 : i32
    %c0_i32_0 = arith.constant 0 : i32
    %c0_i32_1 = arith.constant 0 : i32
    return %c0_i32, %c0_i32_0 : i32, i32
  }
  func.func @transform_1(%arg0: i32, %arg1: i32) -> (i32, i32) {
    %c0_i32 = arith.constant 0 : i32
    %c0_i32_0 = arith.constant 0 : i32
    %c0_i32_1 = arith.constant 0 : i32
    return %c0_i32, %c0_i32_0 : i32, i32
  }
  func.func @transform_2(%arg0: i32, %arg1: i32) -> (i32, i32) {
    %c2_i32 = arith.constant 2 : i32
    %c0_i32 = arith.constant 0 : i32
    %0 = arith.cmpi eq, %c2_i32, %c0_i32 : i32
    %c1_i32 = arith.constant 1 : i32
    %1 = arith.select %0, %c1_i32, %c2_i32 : i32
    %2 = arith.remsi %arg0, %1 : i32
    %c0_i32_0 = arith.constant 0 : i32
    %3 = arith.cmpi ne, %2, %c0_i32_0 : i32
    %c0_i32_1 = arith.constant 0 : i32
    %4 = arith.cmpi slt, %2, %c0_i32_1 : i32
    %c0_i32_2 = arith.constant 0 : i32
    %5 = arith.cmpi slt, %1, %c0_i32_2 : i32
    %6 = arith.xori %4, %5 : i1
    %7 = arith.andi %6, %3 : i1
    %8 = arith.addi %2, %1 : i32
    %9 = arith.select %7, %8, %2 : i32
    %c2_i32_3 = arith.constant 2 : i32
    %10 = arith.muli %c2_i32_3, %arg1 : i32
    %c3_i32 = arith.constant 3 : i32
    %11 = arith.subi %c3_i32, %10 : i32
    %12 = arith.muli %9, %11 : i32
    %13 = arith.addi %arg1, %12 : i32
    %c0_i32_4 = arith.constant 0 : i32
    %c0_i32_5 = arith.constant 0 : i32
    return %c0_i32_4, %13 : i32, i32
  }
  func.func @transform_3(%arg0: i32, %arg1: i32) -> (i32, i32) {
    %c2_i32 = arith.constant 2 : i32
    %c0_i32 = arith.constant 0 : i32
    %0 = arith.cmpi eq, %c2_i32, %c0_i32 : i32
    %c1_i32 = arith.constant 1 : i32
    %1 = arith.select %0, %c1_i32, %c2_i32 : i32
    %2 = arith.remsi %arg0, %1 : i32
    %c0_i32_0 = arith.constant 0 : i32
    %3 = arith.cmpi ne, %2, %c0_i32_0 : i32
    %c0_i32_1 = arith.constant 0 : i32
    %4 = arith.cmpi slt, %2, %c0_i32_1 : i32
    %c0_i32_2 = arith.constant 0 : i32
    %5 = arith.cmpi slt, %1, %c0_i32_2 : i32
    %6 = arith.xori %4, %5 : i1
    %7 = arith.andi %6, %3 : i1
    %8 = arith.addi %2, %1 : i32
    %9 = arith.select %7, %8, %2 : i32
    %c2_i32_3 = arith.constant 2 : i32
    %10 = arith.muli %c2_i32_3, %arg1 : i32
    %c3_i32 = arith.constant 3 : i32
    %11 = arith.subi %c3_i32, %10 : i32
    %12 = arith.muli %9, %11 : i32
    %13 = arith.addi %arg1, %12 : i32
    %c0_i32_4 = arith.constant 0 : i32
    %c0_i32_5 = arith.constant 0 : i32
    return %c0_i32_4, %13 : i32, i32
  }
  func.func @transform_4(%arg0: i32, %arg1: i32) -> (i32, i32) {
    %c2_i32 = arith.constant 2 : i32
    %c0_i32 = arith.constant 0 : i32
    %0 = arith.cmpi eq, %c2_i32, %c0_i32 : i32
    %c1_i32 = arith.constant 1 : i32
    %1 = arith.select %0, %c1_i32, %c2_i32 : i32
    %2 = arith.remsi %arg0, %1 : i32
    %c0_i32_0 = arith.constant 0 : i32
    %3 = arith.cmpi ne, %2, %c0_i32_0 : i32
    %c0_i32_1 = arith.constant 0 : i32
    %4 = arith.cmpi slt, %2, %c0_i32_1 : i32
    %c0_i32_2 = arith.constant 0 : i32
    %5 = arith.cmpi slt, %1, %c0_i32_2 : i32
    %6 = arith.xori %4, %5 : i1
    %7 = arith.andi %6, %3 : i1
    %8 = arith.addi %2, %1 : i32
    %9 = arith.select %7, %8, %2 : i32
    %c2_i32_3 = arith.constant 2 : i32
    %10 = arith.muli %c2_i32_3, %arg1 : i32
    %c3_i32 = arith.constant 3 : i32
    %11 = arith.subi %c3_i32, %10 : i32
    %12 = arith.muli %9, %11 : i32
    %13 = arith.addi %arg1, %12 : i32
    %c0_i32_4 = arith.constant 0 : i32
    %c0_i32_5 = arith.constant 0 : i32
    return %13, %c0_i32_4 : i32, i32
  }
  func.func @transform_5(%arg0: i32, %arg1: i32) -> (i32, i32) {
    %c0_i32 = arith.constant 0 : i32
    %c0_i32_0 = arith.constant 0 : i32
    %c0_i32_1 = arith.constant 0 : i32
    return %c0_i32, %c0_i32_0 : i32, i32
  }
  func.func @transform_6(%arg0: i32, %arg1: i32) -> (i32, i32) {
    %c0_i32 = arith.constant 0 : i32
    %c0_i32_0 = arith.constant 0 : i32
    return %arg0, %c0_i32 : i32, i32
  }
  func.func @transform_7(%arg0: i32, %arg1: i32) -> (i32, i32) {
    %c0_i32 = arith.constant 0 : i32
    %c0_i32_0 = arith.constant 0 : i32
    return %arg0, %c0_i32 : i32, i32
  }
}

</mosaic_0001>

<bundles_post_ra>
// kernel: tpu_custom_call.1
= control target key start
LH: loop header
LB: loop body
LE: loop exit
PB: predicated region body
PF: predicated region fallthrough
CT: control target
= control target key end

     0   :  { %s2368_s0 = inlined_call_operand.hbm [shape: f32[1,128], index: 0, kind: input, shape index: {}]   ;;  %s2369_s1 = inlined_call_operand.hbm [shape: f32[1,128], index: 1, kind: input, shape index: {}]   ;;  %s2370_s2 = inlined_call_operand.hbm [shape: f32[128,1024], index: 2, kind: input, shape index: {}]   ;;  %s2371_s3 = inlined_call_operand.hbm [shape: f32[1,1024], index: 3, kind: input, shape index: {}]   ;;  %s2372_s4 = inlined_call_operand.hbm [shape: f32[512,128], index: 4, kind: input, shape index: {}]   ;;  %s2373_s5 = inlined_call_operand.hbm [shape: f32[1,128], index: 5, kind: input, shape index: {}]   ;;  %s2374_s6 = inlined_call_operand.hbm [shape: f32[16,128], index: 6, kind: input, shape index: {}]   ;;  %s2375_s7 = inlined_call_operand.hbm [shape: f32[16,128], index: 7, kind: output, shape index: {}]  }
   0x1   :  { %2405 = sst [smem:[#allocation34_spill]] %s2368_s0 }
   0x2   :  { %2406 = sst [smem:[#allocation35_spill]] %s2370_s2 }
   0x3   :  { %2407 = sst [smem:[#allocation36_spill]] %s2374_s6 }
   0x4   :  { %2408 = sst [smem:[#allocation37_spill]] %s2375_s7 }
   0x5   :  { %12 = vsyncpa [#allocation5], 0 }
   0x6   :  { %13 = vsyncpa [#allocation8], 0 }
   0x7   :  { %14 = vsyncpa [#allocation14], 0 }
   0x8   :  { %16 = vsyncpa [#allocation14 + $0x1], 0 }
   0x9   :  { %17 = vsyncpa [#allocation6], 0 }
   0xa   :  { %19 = vsyncpa [#allocation6 + $0x1], 0  ;;  %s1863_s24 = smov 0   ;;  %s1865_s25 = smov 0  }
   0xb   :  { %s1867_s26 = smov 0   ;;  %s1869_s27 = smov 0  }
   0xc   :  { %s1871_s28 = smov 0   ;;  %s1873_s29 = smov 0  }
   0xd   :  { %s1875_s30 = smov 0   ;;  %s1877_s8 = smov 0  }
   0xe   :  { %s1879_s9 = smov 0   ;;  %s1881_s10 = smov 0  }
   0xf   :  { %s1883_s11 = smov 0  }
  0x10 LB: > { %2409 = sst [smem:[#allocation22_spill]] %s1765_s24  ;;  %s1917_s12 = sadd.s32 4294967295, %s1805_s11   ;;  %s1805_s11 = sphi %s1883_s11, %s25_s11   ;;  %s1801_s10 = sphi %s1881_s10, %s2485_s10   ;;  %s1797_s9 = sphi %s1879_s9, %s2481_s9   ;;  %s1793_s8 = sphi %s1877_s8, %s2480_s8   ;;  %s1789_s30 = sphi %s1875_s30, %s2479_s30   ;;  %s1785_s29 = sphi %s1873_s29, %s2484_s29   ;;  %s1781_s28 = sphi %s1871_s28, %s2483_s28   ;;  %s1777_s27 = sphi %s1869_s27, %s2478_s27   ;;  %s1773_s26 = sphi %s1867_s26, %s2482_s26   ;;  %s1769_s25 = sphi %s1865_s25, %s2477_s25   ;;  %s1765_s24 = sphi %s1863_s24, %s2476_s24  }
  0x11   : > { %2410 = sst [smem:[#allocation23_spill]] %s1769_s25  ;;  %p125_p0 = scmp.ne.s32.totalorder %s1785_s29, %s1781_s28 }
  0x12   : > { %2411 = sst [smem:[#allocation24_spill]] %s1773_s26  ;;  %p2379_p1 = scmp.eq.s32.totalorder %s1805_s11, 0 }
  0x13   : > { %2412 = sst [smem:[#allocation25_spill]] %s1781_s28  ;;  %p131_p2 = scmp.ne.s32.totalorder %s1781_s28, %s1777_s27 }
  0x14   : > { %2413 = sst [smem:[#allocation26_spill]] %s1789_s30  ;;  %p2378_p3 = scmp.eq.s32.totalorder %s1917_s12, 0 }
  0x15   : > { %2414 = sst [smem:[#allocation27_spill]] %s1793_s8  ;;  %p127_p4 = por %p2379_p1, %p125_p0 }
  0x16   : > { %2415 = sst [smem:[#allocation28_spill]] %s1797_s9  ;;  %p1139_p5 = scmp.ge.s32.totalorder %s1805_s11, 1 }
  0x17   : > { %2416 = sst [smem:[#allocation29_spill]] %s1801_s10  ;;  %p1930_p6 = por %p2378_p3, %p131_p2 }
  0x18   : > { %2417 = sst [smem:[#allocation30_spill]] %s1917_s12  ;;  %p331_p7 = scmp.lt.s32.totalorder %s1805_s11, 9 }
  0x19   : > { %s2418_s14 = scalar_select %p1930_p6, 1, 0 }
  0x1a   : > { %p1935_p8 = pnand %p1139_p5, %p331_p7  ;;  %s1807_s16 = smov [#allocation4]  }
  0x1b   : > { %2419 = sst [smem:[#allocation31_spill]] %s2418_s14  ;;  %s344_s17 = sshll.u32 %s1807_s16, 4  ;;  %s345_s17 = int_to_ptr.vmem [resolvable:$true] %s344_s17 }
  0x1c   : > { %s2420_s15 = scalar_select %p1935_p8, 1, 0 }
  0x1d   : > { %p1321_p9 = pneg %p1935_p8  ;;  %p2377_p10 = scmp.lt.s32.totalorder %s1805_s11, 8 }
  0x1e   : > { %2421 = sst [smem:[#allocation32_spill]] %s2420_s15  ;;  %s2424_s0 = sld [smem:[#allocation34_spill]] }
  0x1f   : > { %p1944_p11 = pnand %p1321_p9, %p2378_p3  ;;  %p1950_p12 = pnand %p2377_p10, %p127_p4 }
  0x21   : > { %s2422_s18 = scalar_select %p1944_p11, 1, 0 }
  0x22   : > { %s2423_s19 = scalar_select %p1950_p12, 1, 0 }
  0x23   : > { %p1962_p0 = pneg %p1944_p11 }
  0x24   : > { %s1463_s22 = scalar_lea.hbm %s2424_s0, 16 }
  0x25   : > { %p1464_p13 = scmp.ne.s32.totalorder %s2424_s0, %s1463_s22  ;;  %p1470_p5 = scmp.lt.u32.totalorder %s1463_s22, %s2424_s0 }
  0x26   : > { %s2425_s16 = scalar_select %p1962_p0, 1, 0 }
  0x27   : > { %p1466_p2 = pnand %p1962_p0, %p1464_p13 }
  0x29   : > { %p1467_p4 = pneg %p1466_p2 }
  0x2b   : > { %p1472_p7 = pnand %p1470_p5, %p1467_p4 }
  0x2d   : > { %1475 = shalt.err (!%p1472_p7)
}
  0x2e   : > { %s1476_s20 = scalar_lea.vmem %s345_s17, 16  ;;  %s1483_s21 = scalar_lea.vmem %s345_s17, 32 }
  0x2f   : > { %p1477_p9 = scmp.ne.s32.totalorder %s345_s17, %s1476_s20  ;;  %p1484_p1 = scmp.lt.s32.totalorder %s345_s17, %s345_s17 }
  0x30   : > { %p1485_p6 = scmp.lt.s32.totalorder %s1483_s21, %s1476_s20 }
  0x31   : > { %p1479_p10 = pnand %p1477_p9, %p1962_p0 }
  0x32   : > { %p1486_p8 = por %p1485_p6, %p1484_p1 }
  0x33   : > { %p1480_p3 = pneg %p1479_p10 }
  0x35   : > { %p1487_p12 = pnand %p1486_p8, %p1480_p3 }
  0x37   : > { %1490 = shalt.err (!%p1487_p12)
}
  0x38   : > { %1324 = dma.hbm_to_vmem [thread:$0]  (!%p1944_p11), %s2424_s0, 16, %s345_s17, [#allocation5]  }
  0x39   : > { %s34_s7 = sadd.s32 1, %s1797_s9  ;;  %s37_s13 = sadd.s32 1, %s1801_s10 }
  0x3a   : > { %p35_p10 = scmp.ge.s32.totalorder %s34_s7, 4  ;;  %s84_s22 = ssub.s32 0, %s1801_s10 }
  0x3b   : > { %s1118_s20 = sshll.u32 %s1797_s9, 1  ;;  %s1115_s21 = smin.u32 %s1801_s10, %s84_s22 }
  0x3c   : > { %s2487_s7 = smov (%p35_p10, %s34_s7), 0  ;;  %s2489_s13 = smov (!%p35_p10, %s37_s13), %s1801_s10 }
  0x3d   : > { %2426 = sst [smem:[#allocation33_spill]] %s2487_s7  ;;  %s96_s23 = ssub.s32 3, %s1118_s20 }
  0x3e   : > { %p39_p1 = scmp.ge.s32.totalorder %s2489_s13, 2  ;;  %s86_s27 = sand.u32 1, %s1115_s21  }
  0x3f   : > { %s1122_s8 = sshll.u32 %s2487_s7, 1  ;;  %p1117_p3 = scmp.lt.s32.totalorder %s86_s27, 0 }
  0x40   : > { %s2491_s13 = smov (%p39_p1, %s2489_s13), 0  ;;  %s93_s0 = sadd.s32 2, %s86_s27 }
  0x41   : > { %s100_s17 = ssub.s32 0, %s2491_s13  ;;  %s112_s14 = ssub.s32 3, %s1122_s8 }
  0x42   : > { %s1119_s30 = smin.u32 %s100_s17, %s2491_s13  ;;  %s2493_s0 = smov (!%p1117_p3, %s93_s0), %s86_s27 }
  0x43   : > { %s102_s28 = sand.u32 1, %s1119_s30   ;;  %s377_s15 = sand.u32 1, %s1805_s11  }
  0x44   : > { %s97_s6 = smul.u32 %s96_s23, %s2493_s0  ;;  %p1121_p6 = scmp.lt.s32.totalorder %s102_s28, 0 }
  0x45   : > { %s109_s20 = sadd.s32 2, %s102_s28  ;;  %s1996_s21 = sand.u32 1, %s1785_s29  }
  0x46   : > { %s1993_s22 = sadd.s32 %s1797_s9, %s97_s6  ;;  %s2495_s20 = smov (!%p1121_p6, %s109_s20), %s102_s28 }
  0x47   : > { %s1188_s12 = sshll.u32 %s1993_s22, 8  ;;  %s1144_s24 = sshll.u32 %s1996_s21, 8 }
  0x48   : > { %s2427_s2 = sld [smem:[#allocation35_spill]]  ;;  %s113_s0 = smul.u32 %s112_s14, %s2495_s20 }
  0x49   : > { %s381_s6 = scalar_lea.vmem [#allocation9], %s1144_s24  ;;  %s2013_s28 = scalar_lea.sflag [#allocation5], %s377_s15 }
  0x4a   : > { %s404_s30 = sshll.u32 %s381_s6, 4  ;;  %s114_s23 = sadd.s32 %s113_s0, %s2487_s7  ;;  %s2006_s30 = int_to_ptr.vmem [resolvable:$true] %s404_s30 }
  0x4b   : > { %s115_s9 = ssub.s32 %s1993_s22, %s114_s23  ;;  %p2429_p13 = scmp.ne.s32.totalorder %s2423_s19, 0 }
  0x4c   : > { %p2009_p8 = scmp.eq.s32.totalorder %s115_s9, 0 }
  0x4d   : > { %p2019_p2 = pneg %p2429_p13 }
  0x4e   : > { %s2003_s27 = scalar_lea.hbm %s2427_s2, %s1188_s12  ;;  %s1496_s9 = scalar_lea.hbm %s2427_s2, 16384 }
  0x4f   : > { %s2428_s25 = scalar_select %p2009_p8, 1, 0 }
  0x50   : > { %s1491_s17 = scalar_lea.hbm %s2003_s27, 4096  ;;  %p1497_p7 = scmp.lt.u32.totalorder %s2003_s27, %s2427_s2 }
  0x51   : > { %p1492_p12 = scmp.ne.s32.totalorder %s2003_s27, %s1491_s17  ;;  %p1498_p9 = scmp.lt.u32.totalorder %s1496_s9, %s1491_s17 }
  0x52   : > { %p1500_p1 = scmp.lt.u32.totalorder %s1491_s17, %s2003_s27 }
  0x53   : > { %p1494_p4 = pnand %p2019_p2, %p1492_p12  ;;  %p1499_p10 = por %p1498_p9, %p1497_p7 }
  0x55   : > { %p1495_p5 = pneg %p1494_p4  ;;  %p1501_p3 = por %p1500_p1, %p1499_p10 }
  0x57   : > { %p1502_p6 = pnand %p1501_p3, %p1495_p5 }
  0x59   : > { %1505 = shalt.err (!%p1502_p6)
}
  0x5a   : > { %s1506_s15 = scalar_lea.vmem %s2006_s30, 4096  ;;  %s1808_s0 = smov [#allocation9]  }
  0x5b   : > { %p1507_p12 = scmp.ne.s32.totalorder %s2006_s30, %s1506_s15  ;;  %s1511_s6 = sshll.u32 %s1808_s0, 4  ;;  %s1512_s6 = int_to_ptr.vmem [resolvable:$false] %s1511_s6 }
  0x5c   : > { %s1513_s23 = scalar_lea.vmem %s1512_s6, 8192  ;;  %p1514_p0 = scmp.lt.s32.totalorder %s2006_s30, %s1512_s6 }
  0x5d   : > { %p1509_p4 = pnand %p1507_p12, %p2019_p2  ;;  %p1515_p8 = scmp.lt.s32.totalorder %s1513_s23, %s1506_s15 }
  0x5f   : > { %p1510_p11 = pneg %p1509_p4  ;;  %p1516_p7 = por %p1515_p8, %p1514_p0 }
  0x61   : > { %p1517_p9 = pnand %p1516_p7, %p1510_p11 }
  0x63   : > { %1520 = shalt.err (!%p1517_p9)
}
  0x64   : > { %s1809_s17 = smov 1024   ;;  %s1810_s24 = smov 256  }
  0x65   : > { %s1811_s14 = smov 16   ;;  %s2431_s9 = sadd.s32 1, %s1785_s29 }
  0x66   : > { %1334 = dma.hbm_to_vmem [thread:$0]  (!%p2429_p13), %s2003_s27, 4096, %s2006_s30, %s2013_s28, %s1809_s17, %s1810_s24, %s1811_s14  }
  0x67   : > { %p2432_p5 = scmp.ne.s32.totalorder %s2428_s25, 0  ;;  %s1151_s8 = sshll.u32 %s1996_s21, 1 }
  0x68   : > { %s1812_s15 = smov [#allocation7]   ;;  %s1189_s6 = sshll.u32 %s1993_s22, 5 }
  0x69   : > { %s2048_s20 = scalar_select %p2432_p5, %s1785_s29, %s2431_s9  }
  0x6a   : > { %s355_s0 = sshll.u32 %s1812_s15, 4  ;;  %s1521_s7 = scalar_lea.hbm %s2369_s1, 16  ;;  %s356_s0 = int_to_ptr.vmem [resolvable:$true] %s355_s0 }
  0x6b   : > { %p1522_p11 = scmp.ne.s32.totalorder %s2369_s1, %s1521_s7  ;;  %p2433_p0 = scmp.ne.s32.totalorder %s2425_s16, 0 }
  0x6c   : > { %p1528_p1 = scmp.lt.u32.totalorder %s1521_s7, %s2369_s1 }
  0x6d   : > { %p1524_p8 = pnand %p1522_p11, %p2433_p0 }
  0x6f   : > { %p1525_p10 = pneg %p1524_p8 }
  0x71   : > { %p1530_p3 = pnand %p1528_p1, %p1525_p10 }
  0x73   : > { %1533 = shalt.err (!%p1530_p3)
}
  0x74   : > { %s1534_s30 = scalar_lea.vmem %s356_s0, 16  ;;  %s1541_s2 = scalar_lea.vmem %s356_s0, 32 }
  0x75   : > { %p1535_p6 = scmp.ne.s32.totalorder %s356_s0, %s1534_s30  ;;  %p1542_p7 = scmp.lt.s32.totalorder %s356_s0, %s356_s0 }
  0x76   : > { %p1543_p9 = scmp.lt.s32.totalorder %s1541_s2, %s1534_s30 }
  0x77   : > { %p1537_p12 = pnand %p1535_p6, %p2433_p0 }
  0x78   : > { %p1544_p5 = por %p1543_p9, %p1542_p7 }
  0x79   : > { %p1538_p4 = pneg %p1537_p12 }
  0x7b   : > { %p1545_p13 = pnand %p1544_p5, %p1538_p4 }
  0x7d   : > { %1548 = shalt.err (!%p1545_p13)
}
  0x7e   : > { %p2434_p11 = scmp.ne.s32.totalorder %s2422_s18, 0  ;;  %s2073_s24 = scalar_lea.hbm %s2371_s3, %s1189_s6 }
  0x7f   : > { %s418_s14 = scalar_lea.vmem [#allocation10], %s1151_s8  ;;  %s1549_s15 = scalar_lea.hbm %s2073_s24, 32 }
  0x80   : > { %1327 = dma.hbm_to_vmem [thread:$0]  (!%p2434_p11), %s2369_s1, 16, %s356_s0, [#allocation8]  }
  0x81   : > { %s442_s9 = sshll.u32 %s418_s14, 4  ;;  %p1550_p13 = scmp.ne.s32.totalorder %s2073_s24, %s1549_s15  ;;  %s443_s9 = int_to_ptr.vmem [resolvable:$true] %s442_s9 }
  0x82   : > { %s1554_s0 = scalar_lea.hbm %s2371_s3, 128  ;;  %p1555_p1 = scmp.lt.u32.totalorder %s2073_s24, %s2371_s3 }
  0x83   : > { %p1552_p8 = pnand %p1550_p13, %p2019_p2  ;;  %p1556_p3 = scmp.lt.u32.totalorder %s1554_s0, %s1549_s15 }
  0x84   : > { %p1558_p12 = scmp.lt.u32.totalorder %s1549_s15, %s2073_s24 }
  0x85   : > { %p1553_p10 = pneg %p1552_p8  ;;  %p1557_p6 = por %p1556_p3, %p1555_p1 }
  0x87   : > { %p1559_p4 = por %p1558_p12, %p1557_p6 }
  0x89   : > { %p1560_p7 = pnand %p1559_p4, %p1553_p10 }
  0x8b   : > { %1563 = shalt.err (!%p1560_p7)
}
  0x8c   : > { %s1564_s8 = scalar_lea.vmem %s443_s9, 32  ;;  %s1813_s6 = smov [#allocation10]  }
  0x8d   : > { %p1565_p9 = scmp.ne.s32.totalorder %s443_s9, %s1564_s8  ;;  %s1569_s2 = sshll.u32 %s1813_s6, 4  ;;  %s1570_s2 = int_to_ptr.vmem [resolvable:$false] %s1569_s2 }
  0x8e   : > { %s1571_s26 = scalar_lea.vmem %s1570_s2, 64  ;;  %p1572_p8 = scmp.lt.s32.totalorder %s443_s9, %s1570_s2 }
  0x8f   : > { %p1567_p5 = pnand %p1565_p9, %p2019_p2  ;;  %p1573_p11 = scmp.lt.s32.totalorder %s1571_s26, %s1564_s8 }
  0x91   : > { %p1568_p13 = pneg %p1567_p5  ;;  %p1574_p0 = por %p1573_p11, %p1572_p8 }
  0x93   : > { %p1575_p1 = pnand %p1574_p0, %p1568_p13 }
  0x95   : > { %1578 = shalt.err (!%p1575_p1)
}
  0x96   : > { %p2435_p3 = scmp.ne.s32.totalorder %s2423_s19, 0  ;;  %s1814_s10 = smov [#allocation12]  }
  0x97   : > { %s366_s7 = sshll.u32 %s1814_s10, 4  ;;  %s1158_s17 = sshll.u32 %s1996_s21, 7  ;;  %s367_s7 = int_to_ptr.vmem [resolvable:$true] %s366_s7 }
  0x98   : > { %1337 = dma.hbm_to_vmem [thread:$0]  (!%p2435_p3), %s2073_s24, 32, %s443_s9, %s2013_s28  }
  0x99   : > { %s1579_s23 = scalar_lea.hbm %s2373_s5, 16  ;;  %p2436_p11 = scmp.ne.s32.totalorder %s2425_s16, 0 }
  0x9a   : > { %p1580_p0 = scmp.ne.s32.totalorder %s2373_s5, %s1579_s23  ;;  %p1586_p12 = scmp.lt.u32.totalorder %s1579_s23, %s2373_s5 }
  0x9c   : > { %p1582_p10 = pnand %p1580_p0, %p2436_p11 }
  0x9e   : > { %p1583_p6 = pneg %p1582_p10 }
  0xa0   : > { %p1588_p4 = pnand %p1586_p12, %p1583_p6 }
  0xa2   : > { %1591 = shalt.err (!%p1588_p4)
}
  0xa3   : > { %s1592_s24 = scalar_lea.vmem %s367_s7, 16  ;;  %s1599_s21 = scalar_lea.vmem %s367_s7, 32 }
  0xa4   : > { %p1593_p7 = scmp.ne.s32.totalorder %s367_s7, %s1592_s24  ;;  %p1600_p13 = scmp.lt.s32.totalorder %s367_s7, %s367_s7 }
  0xa5   : > { %p1601_p8 = scmp.lt.s32.totalorder %s1599_s21, %s1592_s24 }
  0xa6   : > { %p1595_p9 = pnand %p1593_p7, %p2436_p11 }
  0xa7   : > { %p1602_p1 = por %p1601_p8, %p1600_p13 }
  0xa8   : > { %p1596_p5 = pneg %p1595_p9 }
  0xaa   : > { %p1603_p3 = pnand %p1602_p1, %p1596_p5 }
  0xac   : > { %1606 = shalt.err (!%p1603_p3)
}
  0xad   : > { %p2437_p0 = scmp.ne.s32.totalorder %s2422_s18, 0  ;;  %s1190_s6 = sshll.u32 %s1993_s22, 11 }
  0xae   : > { %s453_s2 = scalar_lea.vmem [#allocation11], %s1158_s17  ;;  %s2116_s14 = scalar_lea.hbm %s2372_s4, %s1190_s6 }
  0xaf   : > { %1330 = dma.hbm_to_vmem [thread:$0]  (!%p2437_p0), %s2373_s5, 16, %s367_s7, [#allocation8]  }
  0xb0   : > { %s476_s26 = sshll.u32 %s453_s2, 4  ;;  %s1607_s18 = scalar_lea.hbm %s2116_s14, 2048  ;;  %s2118_s26 = int_to_ptr.vmem [resolvable:$true] %s476_s26 }
  0xb1   : > { %p1608_p3 = scmp.ne.s32.totalorder %s2116_s14, %s1607_s18  ;;  %s1612_s17 = scalar_lea.hbm %s2372_s4, 8192 }
  0xb2   : > { %p1613_p6 = scmp.lt.u32.totalorder %s2116_s14, %s2372_s4  ;;  %p1614_p12 = scmp.lt.u32.totalorder %s1612_s17, %s1607_s18 }
  0xb3   : > { %p1610_p11 = pnand %p1608_p3, %p2019_p2  ;;  %p1616_p7 = scmp.lt.u32.totalorder %s1607_s18, %s2116_s14 }
  0xb4   : > { %p1615_p4 = por %p1614_p12, %p1613_p6 }
  0xb5   : > { %p1611_p10 = pneg %p1610_p11 }
  0xb6   : > { %p1617_p9 = por %p1616_p7, %p1615_p4 }
  0xb8   : > { %p1618_p5 = pnand %p1617_p9, %p1611_p10 }
  0xba   : > { %1621 = shalt.err (!%p1618_p5)
}
  0xbb   : > { %s1622_s27 = scalar_lea.vmem %s2118_s26, 2048  ;;  %s1815_s0 = smov [#allocation11]  }
  0xbc   : > { %p1623_p13 = scmp.ne.s32.totalorder %s2118_s26, %s1622_s27  ;;  %s1627_s25 = sshll.u32 %s1815_s0, 4  ;;  %s1628_s25 = int_to_ptr.vmem [resolvable:$false] %s1627_s25 }
  0xbd   : > { %s1629_s30 = scalar_lea.vmem %s1628_s25, 4096  ;;  %p1630_p0 = scmp.lt.s32.totalorder %s2118_s26, %s1628_s25 }
  0xbe   : > { %p1625_p8 = pnand %p1623_p13, %p2019_p2  ;;  %p1631_p3 = scmp.lt.s32.totalorder %s1629_s30, %s1622_s27 }
  0xc0   : > { %p1626_p1 = pneg %p1625_p8  ;;  %p1632_p11 = por %p1631_p3, %p1630_p0 }
  0xc2   : > { %p1633_p6 = pnand %p1632_p11, %p1626_p1 }
  0xc4   : > { %1636 = shalt.err (!%p1633_p6)
}
  0xc5   : > { %s1816_s24 = smov 128   ;;  %s2438_s21 = sld [smem:[#allocation29_spill]] }
  0xc6   : > { %s2439_s12 = sld [smem:[#allocation24_spill]]  ;;  %s2440_s9 = sld [smem:[#allocation23_spill]] }
  0xc7   : > { %s2441_s8 = sld [smem:[#allocation22_spill]]  ;;  %s2442_s6 = sld [smem:[#allocation30_spill]] }
  0xc8   : > { %s1817_s2 = smov 8   ;;  %p2443_p2 = scmp.ne.s32.totalorder %s2423_s19, 0 }
  0xc9   : > { %s1114_s16 = sadd.s32 4294967294, %s1805_s11   ;;  %p2444_p7 = scmp.eq.s32.totalorder %s1805_s11, 0 }
  0xca   : > { %1340 = dma.hbm_to_vmem [thread:$0]  (!%p2443_p2), %s2116_s14, 2048, %s2118_s26, %s2013_s28, %s1816_s24, %s1816_s24, %s1817_s2  }
  0xcb   : > { %s278_s10 = ssub.s32 %s2438_s21, %s2491_s13  ;;  %p324_p1 = scmp.eq.s32.totalorder %s1114_s16, 7 }
  0xcc   : > { %p279_p10 = scmp.eq.s32.totalorder %s278_s10, 0  ;;  %s281_s18 = sadd.s32 1, %s2439_s12 }
  0xcd   : > { %p288_p12 = scmp.ne.s32.totalorder %s2439_s12, %s2440_s9  ;;  %p294_p4 = scmp.ne.s32.totalorder %s2440_s9, %s2441_s8 }
  0xce   : > { %s2151_s7 = scalar_select %p279_p10, %s2439_s12, %s281_s18  }
  0xcf   : > { %p290_p9 = por %p288_p12, %p2444_p7  ;;  %p2445_p5 = scmp.eq.s32.totalorder %s2442_s6, 0 }
  0xd0   : > { %p318_p8 = scmp.eq.s32.totalorder %s2442_s6, 7  ;;  %s486_s19 = sand.u32 1, %s2439_s12  }
  0xd1   : > { %p2157_p13 = por %p294_p4, %p2445_p5  ;;  %s1166_s28 = sshll.u32 %s2438_s21, 7 }
  0xd2   : > { %p2164_p0 = por %p318_p8, %p288_p12  ;;  %p2168_p3 = por %p324_p1, %p294_p4 }
  0xd3   : > { %s1165_s17 = sshll.u32 %s486_s19, 3  ;;  %s2449_s27 = sld [smem:[#allocation36_spill]] }
  0xd4   : > { %s2447_s26 = scalar_select %p2164_p0, 1, 0 }
  0xd5   : > { %s2448_s14 = scalar_select %p2168_p3, 1, 0 }
  0xd6   : > { %s490_s30 = scalar_lea.vmem [#allocation13], %s1165_s17  ;;  %p2451_p11 = scmp.lt.s32.totalorder %s1805_s11, 8 }
  0xd7   : > { %s497_s24 = sshll.u32 %s490_s30, 4  ;;  %s487_s12 = scalar_lea.sflag [#allocation14], %s486_s19  ;;  %s2183_s24 = int_to_ptr.vmem [resolvable:$true] %s497_s24 }
  0xd8   : > { %p2179_p6 = pnand %p2451_p11, %p290_p9 }
  0xd9   : > { %s2450_s0 = smov %s2449_s27  ;;  %s2175_s25 = scalar_lea.hbm %s2449_s27, %s1166_s28 }
  0xda   : > { %s1637_s9 = scalar_lea.hbm %s2175_s25, 128  ;;  %p1639_p10 = pneg %p2179_p6 }
  0xdb   : > { %p1638_p2 = scmp.ne.s32.totalorder %s2175_s25, %s1637_s9  ;;  %s1642_s2 = scalar_lea.hbm %s2450_s0, 256 }
  0xdc   : > { %p1643_p7 = scmp.lt.u32.totalorder %s2175_s25, %s2450_s0  ;;  %p1644_p9 = scmp.lt.u32.totalorder %s1642_s2, %s1637_s9 }
  0xdd   : > { %p1640_p12 = pnand %p1639_p10, %p1638_p2  ;;  %p1646_p8 = scmp.lt.u32.totalorder %s1637_s9, %s2175_s25 }
  0xde   : > { %p1645_p5 = por %p1644_p9, %p1643_p7 }
  0xdf   : > { %p1641_p4 = pneg %p1640_p12 }
  0xe0   : > { %p1647_p1 = por %p1646_p8, %p1645_p5 }
  0xe2   : > { %p1648_p11 = pnand %p1647_p1, %p1641_p4 }
  0xe4   : > { %1651 = shalt.err (!%p1648_p11)
}
  0xe5   : > { %s1652_s18 = scalar_lea.vmem %s2183_s24, 128  ;;  %s1818_s19 = smov [#allocation13]  }
  0xe6   : > { %p1653_p2 = scmp.ne.s32.totalorder %s2183_s24, %s1652_s18  ;;  %s1657_s28 = sshll.u32 %s1818_s19, 4  ;;  %s1658_s28 = int_to_ptr.vmem [resolvable:$false] %s1657_s28 }
  0xe7   : > { %s1659_s17 = scalar_lea.vmem %s1658_s28, 256  ;;  %p1660_p0 = scmp.lt.s32.totalorder %s2183_s24, %s1658_s28 }
  0xe8   : > { %p1655_p12 = pnand %p1653_p2, %p1639_p10  ;;  %p1661_p7 = scmp.lt.s32.totalorder %s1659_s17, %s1652_s18 }
  0xea   : > { %p1656_p3 = pneg %p1655_p12  ;;  %p1662_p9 = por %p1661_p7, %p1660_p0 }
  0xec   : > { %p1663_p5 = pnand %p1662_p9, %p1656_p3 }
  0xee   : > { %1666 = shalt.err (!%p1663_p5)
}
  0xef   : > { %1343 = dma.hbm_to_vmem [thread:$0]  (!%p2179_p6), %s2175_s25, 128, %s2183_s24, %s487_s12  }
  0xf0   : > { %s2453_s15 = sld [smem:[#allocation32_spill]] }
  0xf6   : > { %p2454_p4 = scmp.ne.s32.totalorder %s2453_s15, 0 }
  0xf7   : > { %s2455_s23 = sld [smem:[#allocation30_spill]] (!%p2454_p4) }
  0xf8   : > { %506 = sbr.rel (%p2454_p4) target bundleno = 1013 (0x3f5), region = 48 }
  0xfd   : > { %p2456_p10 = scmp.eq.s32.totalorder (!%p2454_p4), %s2455_s23, 0 }
  0xff   : > { %1740 = dma.done.wait (%p2456_p10), [#allocation5], 16   ;;  %p2457_p8 = pmov %p2456_p10 }
 0x101   : > { %1742 = vsyncadd (%p2457_p8), [#allocation5], 4294967280  ;;  %p2458_p1 = pmov %p2457_p8 }
 0x103   : > { %1744 = dma.done.wait (%p2458_p1), [#allocation8], 16   ;;  %p2459_p0 = pmov %p2458_p1 }
 0x104   : > { %s2460_s27 = sld [smem:[#allocation25_spill]]  ;;  %s516_s21 = sand.u32 1, %s2455_s23  }
 0x105   : > { %1746 = vsyncadd (%p2459_p0), [#allocation8], 4294967280  ;;  %s2461_s30 = sld [smem:[#allocation31_spill]]  ;;  %s517_s12 = scalar_lea.sflag [#allocation5], %s516_s21 }
 0x10a   : > { %s518_s25 = sand.u32 1, %s2460_s27  }
 0x10b   : > { %s1170_s24 = sshll.u32 %s518_s25, 8  ;;  %p2462_p3 = scmp.ne.s32.totalorder %s2461_s30, 0 }
 0x10c   : > { %s2222_s9 = scalar_lea.vmem [#allocation9], %s1170_s24 }
 0x10d   : > { %1748 = dma.done.wait (%p2462_p3), %s517_s12, 6176  }
 0x10e   : > { %1750 = vsyncadd (%p2462_p3), %s517_s12, 4294961120  ;;  %s1171_s8 = sshll.u32 %s518_s25, 1  ;;  %s1172_s6 = sshll.u32 %s518_s25, 7 }
 0x10f   : > { %s2228_s2 = scalar_lea.vmem [#allocation10], %s1171_s8  ;;  %s2230_s16 = scalar_lea.vmem [#allocation11], %s1172_s6 }
 0x110   : > { %p2463_p6 = pmov %p2459_p0 }
 0x111   : > { %p2464_p11 = pmov %p2459_p0 }
 0x112   : > { %1752 = dma.done.wait (%p2463_p6), [#allocation8], 16  }
 0x113   : > { %1754 = vsyncadd (%p2464_p11), [#allocation8], 4294967280  ;;  %s2465_s10 = sld [smem:[#allocation23_spill]] }
 0x119   : > { %s2237_s18 = sand.u32 1, %s2465_s10  }
 0x11a   : > { %s1174_s19 = sshll.u32 %s2237_s18, 3  ;;  %s548_s28 = scalar_lea.sflag [#allocation14], %s2237_s18 }
 0x11b   : > { %s551_s17 = scalar_lea.vmem [#allocation13], %s1174_s19 }
 0x11c   : > { %1756 = dma.done.wait (%p2157_p13), %s548_s28, 128  }
 0x11d   : > { %1758 = vsyncadd (%p2157_p13), %s548_s28, 4294967168  ;;  %s2245_s15 = scalar_lea.vmem [#allocation15], %s1174_s19  ;;  %s2466_s27 = sld [smem:[#allocation26_spill]] }
 0x123   : > { %p1176_p2 = scmp.ne.s32.totalorder %s2466_s27, 0 }
 0x124   : > { %v652_v0 = vld [vmem:[%s551_s17] sm:$0xff] (!%p1176_p2)  ;;  %v1177_v12 = vld [vmem:[#allocation4] ss:$0 sm:$0xff] (!%p1176_p2)  ;;  %v1178_v14 = vld [vmem:[#allocation7] ss:$0 sm:$0xff] (!%p1176_p2) }
 0x125   : > { %651 = sbr.rel (%p1176_p2) target bundleno = 465 (0x1d1), region = 80  ;;  %653 = vadd.xlane.f32.xlu0 (!%p1176_p2), %v652_v0  ;;  %v657_v1 = vmul.f32 (!%p1176_p2), %v652_v0, %v652_v0 }
 0x129   : > { %658 = vadd.xlane.f32.xlu0 (!%p1176_p2), %v657_v1 }
 0x1b2   : > { %v654_v2 = vpop.xlane.xlu0 %653 }
 0x1b3   : > { %v656_v3 = vmul.f32 0.0078125, %v654_v2 }
 0x1b5   : > { %v661_v5 = vmul.f32 %v656_v3, %v656_v3  ;;  %v664_v10 = vsub.f32 %v652_v0, %v656_v3 }
 0x1b6   : > { %v659_v4 = vpop.xlane.xlu0 %658 }
 0x1b7   : > { %v660_v6 = vmul.f32 0.0078125, %v659_v4 }
 0x1b9   : > { %v662_v7 = vsub.f32 %v660_v6, %v661_v5 }
 0x1bb   : > { %v663_v8 = vmax.f32 %v662_v7, 0.0 }
 0x1bd   : > { %v665_v9 = vadd.f32 1e-05, %v663_v8 }
 0x1bf   : > { %1455 = vrsqrt.f32 %v665_v9 }
 0x1c9   : > { %v1456_v11 = vpop.eup %1455 }
 0x1ca   : > { %v667_v13 = vmul.f32 %v1456_v11, %v664_v10 }
 0x1cc   : > { %v675_v15 = vmul.f32 %v1177_v12, %v667_v13 }
 0x1ce   : > { %v683_v16 = vadd.f32 %v1178_v14, %v675_v15 }
 0x1d0   : > { %684 = vst [vmem:[#allocation3] sm:$0xff] %v683_v16 }
 0x1d1 PF: > { %v687_v17 = vld [vmem:[%s2222_s9 + $0x8] sm:$0xff]  ;;  %v689_v18 = vld [vmem:[%s2222_s9 + $0x18] sm:$0xff]  ;;  %v686_v19 = vld [vmem:[%s2222_s9] sm:$0xff]  ;;  %v1819_v24 = vmov 0.0   ;;  %v1820_v6 = vmov 0.0|0.0   ;;  %vm1821_vm0 = vmmov 0  }
 0x1d2   : > { %v1243_v20 = vpack.c.bf16 %v689_v18, %v687_v17  ;;  %v688_v21 = vld [vmem:[%s2222_s9 + $0x10] sm:$0xff]  ;;  %v691_v22 = vld [vmem:[%s2222_s9 + $0x28] sm:$0xff]  ;;  %v693_v23 = vld [vmem:[%s2222_s9 + $0x38] sm:$0xff]  ;;  %794 = vmatprep.mubr.f32.mxu0 %v1819_v24  ;;  %1275 = vmatprep.subr.bf16.mxu1 %v1820_v6 }
 0x1d3   : > { %v1245_v25 = vpack.c.bf16 %v688_v21, %v686_v19  ;;  %v1247_v26 = vpack.c.bf16 %v693_v23, %v691_v22  ;;  %v690_v27 = vld [vmem:[%s2222_s9 + $0x20] sm:$0xff]  ;;  %v692_v28 = vld [vmem:[%s2222_s9 + $0x30] sm:$0xff]  ;;  %v695_v29 = vld [vmem:[%s2222_s9 + $0x48] sm:$0xff]  ;;  %1240 = vmatprep.mubr.msk.f32.mxu1 %vm1821_vm0, %v1819_v24 }
 0x1d4   : > { %1244 = vmatprep.subr.bf16.mxu0 %v1243_v20  ;;  %v697_v30 = vld [vmem:[%s2222_s9 + $0x58] sm:$0xff]  ;;  %v1249_v31 = vpack.c.bf16 %v692_v28, %v690_v27  ;;  %v694_v33 = vld [vmem:[%s2222_s9 + $0x40] sm:$0xff]  ;;  %v696_v34 = vld [vmem:[%s2222_s9 + $0x50] sm:$0xff] }
 0x1d5   : > { %1246 = vmatpush1.bf16.msra.mxu0 %v1245_v25  ;;  %v1251_v32 = vpack.c.bf16 %v697_v30, %v695_v29  ;;  %v699_v35 = vld [vmem:[%s2222_s9 + $0x68] sm:$0xff]  ;;  %v701_v36 = vld [vmem:[%s2222_s9 + $0x78] sm:$0xff]  ;;  %v1253_v37 = vpack.c.bf16 %v696_v34, %v694_v33  ;;  %v698_v39 = vld [vmem:[%s2222_s9 + $0x60] sm:$0xff]  ;;  %v720_v29 = vlaneseq }
 0x1d6   : > { %1248 = vmatprep.subr.bf16.mxu0 %v1247_v26  ;;  %v1255_v38 = vpack.c.bf16 %v701_v36, %v699_v35  ;;  %v700_v40 = vld [vmem:[%s2222_s9 + $0x70] sm:$0xff]  ;;  %v703_v41 = vld [vmem:[%s2222_s9 + $0x88] sm:$0xff]  ;;  %v705_v42 = vld [vmem:[%s2222_s9 + $0x98] sm:$0xff] }
 0x1d7   : > { %v1257_v43 = vpack.c.bf16 %v700_v40, %v698_v39  ;;  %v1259_v44 = vpack.c.bf16 %v705_v42, %v703_v41  ;;  %v702_v45 = vld [vmem:[%s2222_s9 + $0x80] sm:$0xff]  ;;  %v704_v46 = vld [vmem:[%s2222_s9 + $0x90] sm:$0xff]  ;;  %v707_v47 = vld [vmem:[%s2222_s9 + $0xa8] sm:$0xff]  ;;  %v721_v30 = vshrl.u32 %v720_v29, 7 }
 0x1d8   : > { %v709_v48 = vld [vmem:[%s2222_s9 + $0xb8] sm:$0xff]  ;;  %v1261_v49 = vpack.c.bf16 %v704_v46, %v702_v45  ;;  %v706_v51 = vld [vmem:[%s2222_s9 + $0xa0] sm:$0xff]  ;;  %v708_v52 = vld [vmem:[%s2222_s9 + $0xb0] sm:$0xff] }
 0x1d9   : > { %1250 = vmatpush1.bf16.msra.mxu0 %v1249_v31  ;;  %v1263_v50 = vpack.c.bf16 %v709_v48, %v707_v47  ;;  %v711_v53 = vld [vmem:[%s2222_s9 + $0xc8] sm:$0xff]  ;;  %v713_v54 = vld [vmem:[%s2222_s9 + $0xd8] sm:$0xff]  ;;  %v1265_v55 = vpack.c.bf16 %v708_v52, %v706_v51  ;;  %v710_v57 = vld [vmem:[%s2222_s9 + $0xc0] sm:$0xff]  ;;  %v726_v31 = vsub.s32 1, %v721_v30  ;;  %v722_v33 = vsub.s32 0, %v721_v30 }
 0x1da   : > { %1252 = vmatprep.subr.bf16.mxu0 %v1251_v32  ;;  %v1267_v56 = vpack.c.bf16 %v713_v54, %v711_v53  ;;  %v712_v58 = vld [vmem:[%s2222_s9 + $0xd0] sm:$0xff]  ;;  %v715_v59 = vld [vmem:[%s2222_s9 + $0xe8] sm:$0xff]  ;;  %v717_v60 = vld [vmem:[%s2222_s9 + $0xf8] sm:$0xff] }
 0x1db   : > { %v1269_v61 = vpack.c.bf16 %v712_v58, %v710_v57  ;;  %v1271_v62 = vpack.c.bf16 %v717_v60, %v715_v59  ;;  %v714_v63 = vld [vmem:[%s2222_s9 + $0xe0] sm:$0xff]  ;;  %v716_v0 = vld [vmem:[%s2222_s9 + $0xf0] sm:$0xff] }
 0x1dc   : > { %v1273_v1 = vpack.c.bf16 %v716_v0, %v714_v63  ;;  %v685_v2 = vld [vmem:[#allocation3] sm:$0xff]  ;;  %v813_v3 = vld [vmem:[%s2230_s16] sm:$0xff]  ;;  %v814_v4 = vld [vmem:[%s2230_s16 + $0x8] sm:$0xff] }
 0x1dd   : > { %1254 = vmatpush1.bf16.msra.mxu0 %v1253_v37  ;;  %v1276_v5 = vpack.c.bf16 %v814_v4, %v813_v3  ;;  %v815_v7 = vld [vmem:[%s2230_s16 + $0x10] sm:$0xff]  ;;  %v816_v8 = vld [vmem:[%s2230_s16 + $0x18] sm:$0xff]  ;;  %v817_v10 = vld [vmem:[%s2230_s16 + $0x20] sm:$0xff] }
 0x1de   : > { %1256 = vmatprep.subr.bf16.mxu0 %v1255_v38  ;;  %v1279_v9 = vpack.c.bf16 %v816_v8, %v815_v7  ;;  %v818_v11 = vld [vmem:[%s2230_s16 + $0x28] sm:$0xff]  ;;  %v819_v13 = vld [vmem:[%s2230_s16 + $0x30] sm:$0xff]  ;;  %v820_v14 = vld [vmem:[%s2230_s16 + $0x38] sm:$0xff] }
 0x1df   : > { %1277 = vmatpush3.bf16.msra.mxu1 %v1276_v5  ;;  %v1282_v12 = vpack.c.bf16 %v818_v11, %v817_v10  ;;  %v1285_v15 = vpack.c.bf16 %v820_v14, %v819_v13  ;;  %v821_v16 = vld [vmem:[%s2230_s16 + $0x40] sm:$0xff]  ;;  %v822_v17 = vld [vmem:[%s2230_s16 + $0x48] sm:$0xff]  ;;  %v823_v19 = vld [vmem:[%s2230_s16 + $0x50] sm:$0xff] }
 0x1e0   : > { %1278 = vmatprep.subr.bf16.mxu1 %v1820_v6  ;;  %v1288_v18 = vpack.c.bf16 %v822_v17, %v821_v16  ;;  %v824_v20 = vld [vmem:[%s2230_s16 + $0x58] sm:$0xff]  ;;  %v825_v22 = vld [vmem:[%s2230_s16 + $0x60] sm:$0xff]  ;;  %v826_v23 = vld [vmem:[%s2230_s16 + $0x68] sm:$0xff] }
 0x1e1   : > { %1258 = vmatpush1.bf16.msra.mxu0 %v1257_v43  ;;  %v1291_v21 = vpack.c.bf16 %v824_v20, %v823_v19  ;;  %v1294_v25 = vpack.c.bf16 %v826_v23, %v825_v22  ;;  %v827_v26 = vld [vmem:[%s2230_s16 + $0x70] sm:$0xff]  ;;  %v828_v27 = vld [vmem:[%s2230_s16 + $0x78] sm:$0xff] }
 0x1e2   : > { %1260 = vmatprep.subr.bf16.mxu0 %v1259_v44  ;;  %v1297_v28 = vpack.c.bf16 %v828_v27, %v827_v26  ;;  %v718_v32 = vld [vmem:[%s2228_s2] sm:$0x3] }
 0x1e3   : > { %1280 = vmatpush3.bf16.msra.mxu1 %v1279_v9  ;;  %v727_v34 = vrot.slane %v718_v32, %v726_v31  ;;  %v723_v35 = vrot.slane %v718_v32, %v722_v33 }
 0x1e4   : > { %1281 = vmatprep.subr.bf16.mxu1 %v1820_v6 }
 0x1e5   : > { %1262 = vmatpush1.bf16.msra.mxu0 %v1261_v49 }
 0x1e6   : > { %1264 = vmatprep.subr.bf16.mxu0 %v1263_v50 }
 0x1e7   : > { %1283 = vmatpush3.bf16.msra.mxu1 %v1282_v12 }
 0x1e8   : > { %1284 = vmatprep.subr.bf16.mxu1 %v1820_v6 }
 0x1e9   : > { %1266 = vmatpush1.bf16.msra.mxu0 %v1265_v55 }
 0x1ea   : > { %1268 = vmatprep.subr.bf16.mxu0 %v1267_v56 }
 0x1eb   : > { %1286 = vmatpush3.bf16.msra.mxu1 %v1285_v15 }
 0x1ec   : > { %1287 = vmatprep.subr.bf16.mxu1 %v1820_v6 }
 0x1ed   : > { %1270 = vmatpush1.bf16.msra.mxu0 %v1269_v61 }
 0x1ee   : > { %1272 = vmatprep.subr.bf16.mxu0 %v1271_v62 }
 0x1ef   : > { %1289 = vmatpush3.bf16.msra.mxu1 %v1288_v18 }
 0x1f0   : > { %1290 = vmatprep.subr.bf16.mxu1 %v1820_v6 }
 0x1f1   : > { %1274 = vmatpush1.bf16.msra.mxu0 %v1273_v1 }
 0x1f3   : > { %1292 = vmatpush3.bf16.msra.mxu1 %v1291_v21 }
 0x1f4   : > { %795 = vmatmul.mubr.f32.vlgmr.msra.gmra.mrb[0].mxu0 %v685_v2  ;;  %1293 = vmatprep.subr.bf16.mxu1 %v1820_v6 }
 0x1f7   : > { %1295 = vmatpush3.bf16.msra.mxu1 %v1294_v25 }
 0x1f8   : > { %1296 = vmatprep.subr.bf16.mxu1 %v1820_v6 }
 0x1fb   : > { %1298 = vmatpush3.bf16.msra.mxu1 %v1297_v28 }
 0x2c7   : > { %v796_v36 = vpop.f32.mrb[0].mxu0 }
 0x2c8   : > { %v798_v37 = vpop.f32.mrb[1].mxu0  ;;  %v797_v24 = vadd.f32 %v796_v36, %v723_v35 }
 0x2c9   : > { %v799_v38 = vadd.f32 %v798_v37, %v727_v34 }
 0x2ca   : > { %v802_v40 = vmul.f32 0.70710677, %v797_v24  ;;  %v801_v45 = vmul.f32 0.5, %v797_v24 }
 0x2cb   : > { %v1179_v39 = vmul.f32 -1.442695, %v799_v38 }
 0x2cd   : > { %1457 = vpow2.f32 %v1179_v39 }
 0x2ce   : > { %1459 = verf.f32 %v802_v40 }
 0x2d7   : > { %v1458_v41 = vpop.eup %1457 }
 0x2d8   : > { %v809_v42 = vadd.f32 1.0, %v1458_v41  ;;  %v1460_v43 = vpop.eup %1459 }
 0x2d9   : > { %v804_v44 = vadd.f32 1.0, %v1460_v43 }
 0x2da   : > { %1461 = vrcp.f32 %v809_v42 }
 0x2db   : > { %v805_v46 = vmul.f32 %v804_v44, %v801_v45 }
 0x2e4   : > { %v1462_v47 = vpop.eup %1461 }
 0x2e5   : > { %v812_v48 = vmul.f32 %v1462_v47, %v805_v46 }
 0x2e7   : > { %1241 = vmatmul.mubr.f32.vlgmr.msra.gmra.mrb[0].mxu1 %v812_v48 }
 0x3b5   : > { %901 = sbr.rel (%p1176_p2) target bundleno = 956 (0x3bc), region = 84 }
 0x3ba   : > { %v895_v49 = vpop.f32.mrb[0].mxu1 }
 0x3bb   : > { %v1242_v50 = vpop.f32.mrb[1].mxu1  ;;  %902 = vst [vmem:[#allocation2] sm:$0xff] (!%p1176_p2), %v895_v49 }
 0x3bc PF: > { %s2468_s23 = sld [smem:[#allocation26_spill]] }
 0x3c2   : > { %p1181_p13 = scmp.eq.s32.totalorder %s2468_s23, 0 }
 0x3c3   : > { %v907_v51 = vld [vmem:[#allocation2] sm:$0xff] (!%p1181_p13) }
 0x3c4   : > { %906 = sbr.rel (%p1181_p13) target bundleno = 971 (0x3cb), region = 88  ;;  %v908_v52 = vadd.f32 (!%p1181_p13), %v907_v51, %v895_v49 }
 0x3c6   : > { %909 = vst [vmem:[#allocation2] sm:$0xff] (!%p1181_p13), %v908_v52 }
 0x3cb PF: > { %s2469_s30 = sld [smem:[#allocation26_spill]] }
 0x3d1   : > { %p1182_p12 = scmp.ne.s32.totalorder %s2469_s30, 3 }
 0x3d2   : > { %v914_v53 = vld [vmem:[#allocation2] sm:$0xff] (!%p1182_p12)  ;;  %v1183_v54 = vld [vmem:[#allocation12] ss:$0 sm:$0xff] (!%p1182_p12) }
 0x3d3   : > { %913 = sbr.rel (%p1182_p12) target bundleno = 986 (0x3da), region = 92  ;;  %v922_v55 = vadd.f32 (!%p1182_p12), %v1183_v54, %v914_v53 }
 0x3d5   : > { %923 = vst [vmem:[%s2245_s15] sm:$0xff] (!%p1182_p12), %v922_v55 }
 0x3da PF: > { %s2470_s21 = sld [smem:[#allocation27_spill]]  ;;  %s2471_s9 = sld [smem:[#allocation37_spill]] }
 0x3db   : > { %s938_s2 = sshll.u32 %s2245_s15, 4  ;;  %s925_s16 = scalar_lea.sflag [#allocation6], %s2237_s18  ;;  %s939_s2 = int_to_ptr.vmem [resolvable:$true] %s938_s2 }
 0x3dc   : > { %s1667_s10 = scalar_lea.vmem %s939_s2, 128  ;;  %p2473_p9 = scmp.ne.s32.totalorder %s2447_s26, 0 }
 0x3dd   : > { %p1668_p7 = scmp.ne.s32.totalorder %s939_s2, %s1667_s10  ;;  %s1822_s19 = smov [#allocation15]  }
 0x3de   : > { %s1671_s28 = sshll.u32 %s1822_s19, 4  ;;  %s1672_s28 = int_to_ptr.vmem [resolvable:$false] %s1671_s28 }
 0x3df   : > { %p1669_p5 = pnand %p1668_p7, %p2473_p9  ;;  %s1673_s17 = scalar_lea.vmem %s1672_s28, 256 }
 0x3e0   : > { %s1185_s25 = sshll.u32 %s2470_s21, 7  ;;  %s2472_s6 = smov %s2471_s9 }
 0x3e1   : > { %s2310_s8 = scalar_lea.hbm %s2471_s9, %s1185_s25  ;;  %p1670_p4 = pneg %p1669_p5 }
 0x3e2   : > { %p1674_p10 = scmp.lt.s32.totalorder %s939_s2, %s1672_s28  ;;  %p1675_p8 = scmp.lt.s32.totalorder %s1673_s17, %s1667_s10 }
 0x3e4   : > { %p1676_p1 = por %p1675_p8, %p1674_p10 }
 0x3e6   : > { %p1677_p0 = pnand %p1676_p1, %p1670_p4 }
 0x3e8   : > { %1680 = shalt.err (!%p1677_p0)
}
 0x3e9   : > { %s1681_s18 = scalar_lea.hbm %s2310_s8, 128  ;;  %s1685_s22 = scalar_lea.hbm %s2472_s6, 256 }
 0x3ea   : > { %p1682_p3 = scmp.ne.s32.totalorder %s2310_s8, %s1681_s18  ;;  %p1686_p2 = scmp.lt.u32.totalorder %s2310_s8, %s2472_s6 }
 0x3eb   : > { %p1687_p13 = scmp.lt.u32.totalorder %s1685_s22, %s1681_s18  ;;  %p1689_p7 = scmp.lt.u32.totalorder %s1681_s18, %s2310_s8 }
 0x3ec   : > { %p1683_p6 = pnand %p1682_p3, %p2473_p9 }
 0x3ed   : > { %p1688_p12 = por %p1687_p13, %p1686_p2 }
 0x3ee   : > { %p1684_p11 = pneg %p1683_p6 }
 0x3ef   : > { %p1690_p5 = por %p1689_p7, %p1688_p12 }
 0x3f1   : > { %p1691_p4 = pnand %p1690_p5, %p1684_p11 }
 0x3f3   : > { %1694 = shalt.err (!%p1691_p4)
}
 0x3f4   : > { %1319 = dma.vmem_to_hbm [thread:$0]  (%p2473_p9), %s939_s2, 128, %s2310_s8, %s925_s16  }
 0x3f5 PF: > { %s2474_s21 = sld [smem:[#allocation22_spill]]  ;;  %p1355_p10 = scmp.ge.s32.totalorder %s1805_s11, 2 }
 0x3f6   : > { %p2475_p8 = scmp.ne.s32.totalorder %s2448_s14, 0 }
 0x3f8   : > { %p1345_p1 = pnand %p1355_p10, %p2475_p8 }
 0x3fb   : > { %s950_s25 = sand.u32 1, %s2474_s21  }
 0x3fc   : > { %s951_s24 = scalar_lea.sflag [#allocation6], %s950_s25 }
 0x3fd   : > { %1760 = dma.done.wait (!%p1345_p1), %s951_s24, 128  }
 0x3fe   : > { %1762 = vsyncadd (!%p1345_p1), %s951_s24, 4294967168  ;;  %s25_s11 = sadd.s32 1, %s1805_s11   ;;  %s2476_s24 = sld [smem:[#allocation23_spill]] }
 0x3ff   : > { %p22_p0 = scmp.ge.s32.totalorder %s25_s11, 10   ;;  %s2477_s25 = sld [smem:[#allocation24_spill]] }
 0x400   : > { %s2478_s27 = sld [smem:[#allocation25_spill]]  ;;  %s2479_s30 = sld [smem:[#allocation28_spill]] }
 0x401   : > { %s2480_s8 = sld [smem:[#allocation29_spill]]  ;;  %s2481_s9 = sld [smem:[#allocation33_spill]] }
 0x402   : > { %s2482_s26 = smov %s2151_s7  ;;  %s2483_s28 = smov %s1785_s29 }
 0x403   : > { %s2484_s29 = smov %s2048_s20  ;;  %s2485_s10 = smov %s2491_s13 }
 0x404   :  { %24 = sbr.rel (!%p22_p0) target bundleno = 16 (0x10), region = 155 }
 0x40b   :  { %956 = vsyncpa [#allocation5], 1 }
 0x40c   :  { %958 = vsyncpa [#allocation5 + $0x1], 1 }
 0x40d   :  { %959 = vsyncpa [#allocation8], 1 }
 0x40e   :  { %960 = vsyncpa [#allocation14], 1 }
 0x40f   :  { %962 = vsyncpa [#allocation14 + $0x1], 1 }
 0x410   :  { %963 = vsyncpa [#allocation6], 1 }
 0x411   :  { %965 = vsyncpa [#allocation6 + $0x1], 1 }

</bundles_post_ra>
